<compile_context>
chip_gen: v7x
topology: tpu7x:2x2x1
jax: 0.10.0
libtpu: 0.0.40
codegen_flags: <defaults>
</compile_context>

<pallas_src>
import functools

import jax
import jax.numpy as jnp
from jax import lax
from jax.experimental import pallas as pl
from jax.experimental.pallas import tpu as pltpu


def _label_smoothing_kernel(x_ref, t_ref, out_ref, acc_ref, *,
                            confidence, smoothing_value, ignore_index,
                            n_classes, batch, tile_b, needs_mask):
    """Grid = (P parallel batch splits, steps over batch tiles)."""
    i = pl.program_id(1)

    @pl.when(i == 0)
    def _():
        acc_ref[...] = jnp.zeros_like(acc_ref)

    x = x_ref[...].astype(jnp.float32)          # (tb, C) — cast on load (bf16 ok)
    t = t_ref[...]                              # (tb, 1) int32

    # Row-wise logsumexp pieces (lane/XLU reductions).
    m = jnp.max(x, axis=-1, keepdims=True)                          # (tb, 1)
    z = x - m                                                       # (tb, C)
    lse = jnp.log(jnp.sum(jnp.exp(z), axis=-1, keepdims=True))      # (tb, 1)
    sum_z = jnp.sum(z, axis=-1, keepdims=True)                      # (tb, 1)

    # z at the target column via masked lane-sum (no log_p / weight tensors).
    col = lax.broadcasted_iota(jnp.int32, z.shape, 1)
    z_t = jnp.sum(jnp.where(col == t, z, 0.0), axis=-1, keepdims=True)

    # sum_c w_c * log_p_c == sv*(sum_z - C*lse) + (conf - sv)*(z_t - lse)
    #                        [- sv*(z_ig - lse), rows with t==ig zeroed]
    row = (smoothing_value * (sum_z - n_classes * lse)
           + (confidence - smoothing_value) * (z_t - lse))

    if ignore_index >= 0:
        z_ig = jnp.sum(jnp.where(col == ignore_index, z, 0.0),
                       axis=-1, keepdims=True)
        row = row - smoothing_value * (z_ig - lse)
        row = jnp.where(t == ignore_index, 0.0, row)

    if needs_mask:
        # Zero contributions from padded tail rows of the last (partial) tile.
        base = (pl.program_id(0) * pl.num_programs(1) + i) * tile_b
        r = lax.broadcasted_iota(jnp.int32, row.shape, 0)
        row = jnp.where(base + r < batch, row, 0.0)

    # Elementwise (tb, 1) accumulate; all cross-row reduction is deferred.
    acc_ref[...] += row

    @pl.when(i == pl.num_programs(1) - 1)
    def _():
        out_ref[...] = jnp.sum(acc_ref[...], keepdims=True)   # (1, 1) per-core partial


def label_smoothing_loss(output, target, *, label_smoothing=0.1,
                         ignore_index=-100, tb=None, num_parallel=2,
                         max_tile_bytes=2 << 20):
    """output: (B, C) float logits, target: (B,) int. Returns scalar f32 loss.

    Matches LabelSmoothingLoss.forward: -sum(model_prob * log_softmax) / B,
    with smoothing_value = label_smoothing / (C - 1).
    """
    B, C = output.shape
    smoothing_value = label_smoothing / (C - 1)
    confidence = 1.0 - label_smoothing
    t2 = target.astype(jnp.int32).reshape(B, 1)

    itemsize = jnp.dtype(output.dtype).itemsize

    # ---- tiling selection --------------------------------------------------
    if tb is None:
        # ~max_tile_bytes of native-dtype logits per tile (mem-bound kernel:
        # big tiles amortize the ~0.35us/step pipeline overhead).
        tb = max(8, (max_tile_bytes // (C * itemsize)) // 8 * 8)
    else:
        tb = max(8, (tb // 8) * 8)

    if tb >= B:
        tb = B                       # one full-batch tile (block == full dim is legal)
    total_steps = int(pl.cdiv(B, tb))
    needs_mask = (B % tb) != 0

    # Megacore split across TensorCores only when each core gets >= 2 steps.
    P = num_parallel
    if P < 2 or total_steps % P != 0 or total_steps // P < 2:
        P = 1
    steps = total_steps // P

    kernel = functools.partial(
        _label_smoothing_kernel,
        confidence=confidence,
        smoothing_value=smoothing_value,
        ignore_index=ignore_index,
        n_classes=C,
        batch=B,
        tile_b=tb,
        needs_mask=needs_mask,
    )

    cost = pl.CostEstimate(
        flops=int(7 * B * C),
        transcendentals=int(B * C + B),
        bytes_accessed=int(B * C * itemsize + B * 4 + P * 4),
    )

    partials = pl.pallas_call(
        kernel,
        out_shape=jax.ShapeDtypeStruct((P, 1), jnp.float32),
        grid_spec=pltpu.PrefetchScalarGridSpec(
            num_scalar_prefetch=0,
            grid=(P, steps),
            in_specs=[
                pl.BlockSpec((tb, C), lambda p, i: (p * steps + i, 0)),  # logits
                pl.BlockSpec((tb, 1), lambda p, i: (p * steps + i, 0)),  # targets
            ],
            out_specs=pl.BlockSpec((1, 1), lambda p, i: (p, 0)),
            scratch_shapes=[pltpu.VMEM((tb, 1), jnp.float32)],
        ),
        compiler_params=pltpu.CompilerParams(
            dimension_semantics=("parallel", "arbitrary"),
            vmem_limit_bytes=32 << 20),
        cost_estimate=cost,
    )(output, t2)

    # PyTorch divides by the full batch size regardless of ignore_index.
    return -jnp.sum(partials) / jnp.float32(B)


def _reference(output, target, *, label_smoothing=0.1, ignore_index=-100):
    """Plain-JAX reference mirroring the PyTorch forward."""
    B, C = output.shape
    smoothing_value = label_smoothing / (C - 1)
    confidence = 1.0 - label_smoothing
    log_p = jax.nn.log_softmax(output.astype(jnp.float32), axis=1)
    one_hot = jnp.full((C,), smoothing_value, jnp.float32)
    if ignore_index >= 0:
        one_hot = one_hot.at[ignore_index].set(0.0)
    model_prob = jnp.broadcast_to(one_hot[None, :], (B, C))
    model_prob = model_prob.at[jnp.arange(B), target].set(confidence)
    if ignore_index >= 0:
        model_prob = jnp.where((target == ignore_index)[:, None], 0.0, model_prob)
    return -jnp.sum(model_prob * log_p) / B


if __name__ == "__main__":
    key = jax.random.PRNGKey(0)
    kx, kt, kx3, kt3 = jax.random.split(key, 4)

    B, C = 16, 128            # batch_size x n_classes (small test shapes)
    logits = jax.random.normal(kx, (B, C), dtype=jnp.float32)
    target = jax.random.randint(kt, (B,), 0, C, dtype=jnp.int32)

    # Case 1: default ignore_index (disabled).
    loss = jax.block_until_ready(
        label_smoothing_loss(logits, target, label_smoothing=0.1, ignore_index=-100))
    ref = _reference(logits, target, label_smoothing=0.1, ignore_index=-100)
    assert jnp.allclose(loss, ref, rtol=1e-4, atol=1e-4), (loss, ref)

    # Case 2: ignore_index in range, with some targets hitting it.
    target2 = target.at[::4].set(3)
    loss2 = jax.block_until_ready(
        label_smoothing_loss(logits, target2, label_smoothing=0.1, ignore_index=3))
    ref2 = _reference(logits, target2, label_smoothing=0.1, ignore_index=3)
    assert jnp.allclose(loss2, ref2, rtol=1e-4, atol=1e-4), (loss2, ref2)

    # Case 3: non-divisible batch with a forced small tile — exercises the
    # cdiv grid + tail-row masking path.
    B3 = 20
    logits3 = jax.random.normal(kx3, (B3, C), dtype=jnp.float32)
    target3 = jax.random.randint(kt3, (B3,), 0, C, dtype=jnp.int32)
    loss3 = jax.block_until_ready(
        label_smoothing_loss(logits3, target3, label_smoothing=0.1,
                             ignore_index=-100, tb=8))
    ref3 = _reference(logits3, target3, label_smoothing=0.1, ignore_index=-100)
    assert jnp.allclose(loss3, ref3, rtol=1e-4, atol=1e-4), (loss3, ref3)

    print("KERNEL_OK")
</pallas_src>

<mosaic_0001>
module attributes {stable_mosaic.version = 11 : i64} {
  func.func @_label_smoothing_kernel(%arg0: i32, %arg1: i32, %arg2: memref<16x128xf32, #tpu.memory_space<vmem>>, %arg3: memref<16x1xi32, #tpu.memory_space<vmem>>, %arg4: memref<1x1xf32, #tpu.memory_space<vmem>>, %arg5: memref<16x1xf32, #tpu.memory_space<vmem>>) attributes {dimension_semantics = [#tpu.dimension_semantics<parallel>, #tpu.dimension_semantics<arbitrary>], iteration_bounds = array<i64: 1, 1>, scalar_prefetch = 0 : i64, scratch_operands = 1 : i64, tpu.core_type = #tpu.core_type<tc>, window_params = [{transform_indices = @transform_0, window_bounds = array<i64: 16, 128>}, {transform_indices = @transform_1, window_bounds = array<i64: 16, 1>}, {transform_indices = @transform_2, window_bounds = array<i64: 1, 1>}]} {
    %c0_i32 = arith.constant 0 : i32
    %0 = arith.cmpi eq, %arg1, %c0_i32 : i32
    %1 = arith.extui %0 : i1 to i32
    %c0_i32_0 = arith.constant 0 : i32
    %2 = arith.cmpi ne, %1, %c0_i32_0 : i32
    scf.if %2 {
      %cst_17 = arith.constant 0.000000e+00 : f32
      %37 = vector.broadcast %cst_17 : f32 to vector<16x1xf32>
      %c0_18 = arith.constant 0 : index
      %c0_19 = arith.constant 0 : index
      %38 = vector.load %arg5[%c0_18, %c0_19] : memref<16x1xf32, #tpu.memory_space<vmem>>, vector<16x1xf32>
      tpu.vector_store %arg5[%c0_18, %c0_19], %37 {strides = array<i32>} : memref<16x1xf32, #tpu.memory_space<vmem>>, vector<16x1xf32>,
    } else {
    }
    %c0 = arith.constant 0 : index
    %c0_1 = arith.constant 0 : index
    %3 = vector.load %arg2[%c0, %c0_1] : memref<16x128xf32, #tpu.memory_space<vmem>>, vector<16x128xf32>
    %c0_2 = arith.constant 0 : index
    %c0_3 = arith.constant 0 : index
    %4 = vector.load %arg3[%c0_2, %c0_3] : memref<16x1xi32, #tpu.memory_space<vmem>>, vector<16x1xi32>
    %cst = arith.constant dense<0xFF800000> : vector<16xf32>
    %5 = vector.multi_reduction <maximumf>, %3, %cst [1] : vector<16x128xf32> to vector<16xf32>
    %6 = vector.shape_cast %5 : vector<16xf32> to vector<16x1xf32>
    %7 = vector.broadcast %6 : vector<16x1xf32> to vector<16x128xf32>
    %8 = arith.subf %3, %7 : vector<16x128xf32>
    %9 = math.exp %8 : vector<16x128xf32>
    %cst_4 = arith.constant dense<0.000000e+00> : vector<16xf32>
    %10 = vector.multi_reduction <add>, %9, %cst_4 [1] : vector<16x128xf32> to vector<16xf32>
    %11 = vector.shape_cast %10 : vector<16xf32> to vector<16x1xf32>
    %12 = math.log %11 : vector<16x1xf32>
    %cst_5 = arith.constant dense<0.000000e+00> : vector<16xf32>
    %13 = vector.multi_reduction <add>, %8, %cst_5 [1] : vector<16x128xf32> to vector<16xf32>
    %14 = vector.shape_cast %13 : vector<16xf32> to vector<16x1xf32>
    %15 = tpu.iota {dimensions = array<i32: 1>} : vector<16x128xi32>
    %16 = vector.broadcast %4 : vector<16x1xi32> to vector<16x128xi32>
    %17 = arith.cmpi eq, %15, %16 : vector<16x128xi32>
    %cst_6 = arith.constant 0.000000e+00 : f32
    %18 = vector.broadcast %cst_6 : f32 to vector<16x128xf32>
    %19 = arith.select %17, %8, %18 : vector<16x128xi1>, vector<16x128xf32>
    %cst_7 = arith.constant dense<0.000000e+00> : vector<16xf32>
    %20 = vector.multi_reduction <add>, %19, %cst_7 [1] : vector<16x128xf32> to vector<16xf32>
    %21 = vector.shape_cast %20 : vector<16xf32> to vector<16x1xf32>
    %cst_8 = arith.constant 1.280000e+02 : f32
    %22 = vector.broadcast %cst_8 : f32 to vector<16x1xf32>
    %23 = arith.mulf %22, %12 : vector<16x1xf32>
    %24 = arith.subf %14, %23 : vector<16x1xf32>
    %cst_9 = arith.constant 7.87401571E-4 : f32
    %25 = vector.broadcast %cst_9 : f32 to vector<16x1xf32>
    %26 = arith.mulf %25, %24 : vector<16x1xf32>
    %27 = arith.subf %21, %12 : vector<16x1xf32>
    %cst_10 = arith.constant 0.899212599 : f32
    %28 = vector.broadcast %cst_10 : f32 to vector<16x1xf32>
    %29 = arith.mulf %28, %27 : vector<16x1xf32>
    %30 = arith.addf %26, %29 : vector<16x1xf32>
    %c0_11 = arith.constant 0 : index
    %c0_12 = arith.constant 0 : index
    %31 = vector.load %arg5[%c0_11, %c0_12] : memref<16x1xf32, #tpu.memory_space<vmem>>, vector<16x1xf32>
    %32 = arith.addf %31, %30 : vector<16x1xf32>
    %c0_13 = arith.constant 0 : index
    %c0_14 = arith.constant 0 : index
    %33 = vector.load %arg5[%c0_13, %c0_14] : memref<16x1xf32, #tpu.memory_space<vmem>>, vector<16x1xf32>
    tpu.vector_store %arg5[%c0_13, %c0_14], %32 {strides = array<i32>} : memref<16x1xf32, #tpu.memory_space<vmem>>, vector<16x1xf32>,
    %c0_i32_15 = arith.constant 0 : i32
    %34 = arith.cmpi eq, %arg1, %c0_i32_15 : i32
    %35 = arith.extui %34 : i1 to i32
    %c0_i32_16 = arith.constant 0 : i32
    %36 = arith.cmpi ne, %35, %c0_i32_16 : i32
    scf.if %36 {
      %c0_17 = arith.constant 0 : index
      %c0_18 = arith.constant 0 : index
      %37 = vector.load %arg5[%c0_17, %c0_18] : memref<16x1xf32, #tpu.memory_space<vmem>>, vector<16x1xf32>
      %38 = vector.shape_cast %37 : vector<16x1xf32> to vector<1x16x1xf32>
      %cst_19 = arith.constant dense<0.000000e+00> : vector<1xf32>
      %39 = vector.multi_reduction <add>, %38, %cst_19 [1, 2] : vector<1x16x1xf32> to vector<1xf32>
      %40 = vector.shape_cast %39 : vector<1xf32> to vector<1x1x1xf32>
      %41 = vector.extract %40[0, 0, 0] : f32 from vector<1x1x1xf32>
      %42 = vector.broadcast %41 : f32 to vector<1x1xf32>
      %c0_20 = arith.constant 0 : index
      %c0_21 = arith.constant 0 : index
      %43 = vector.load %arg4[%c0_20, %c0_21] : memref<1x1xf32, #tpu.memory_space<vmem>>, vector<1x1xf32>
      tpu.vector_store %arg4[%c0_20, %c0_21], %42 {strides = array<i32>} : memref<1x1xf32, #tpu.memory_space<vmem>>, vector<1x1xf32>,
    } else {
    }
    return
  }
  func.func @transform_0(%arg0: i32, %arg1: i32) -> (i32, i32) {
    %c1_i32 = arith.constant 1 : i32
    %0 = arith.muli %arg0, %c1_i32 : i32
    %1 = arith.addi %0, %arg1 : i32
    %c0_i32 = arith.constant 0 : i32
    %c0_i32_0 = arith.constant 0 : i32
    return %1, %c0_i32 : i32, i32
  }
  func.func @transform_1(%arg0: i32, %arg1: i32) -> (i32, i32) {
    %c1_i32 = arith.constant 1 : i32
    %0 = arith.muli %arg0, %c1_i32 : i32
    %1 = arith.addi %0, %arg1 : i32
    %c0_i32 = arith.constant 0 : i32
    %c0_i32_0 = arith.constant 0 : i32
    return %1, %c0_i32 : i32, i32
  }
  func.func @transform_2(%arg0: i32, %arg1: i32) -> (i32, i32) {
    %c0_i32 = arith.constant 0 : i32
    %c0_i32_0 = arith.constant 0 : i32
    return %arg0, %c0_i32 : i32, i32
  }
}

</mosaic_0001>

<bundles_post_ra>
// kernel: tpu_custom_call.1
= control target key start
LH: loop header
LB: loop body
LE: loop exit
PB: predicated region body
PF: predicated region fallthrough
CT: control target
= control target key end

     0   :  { %v209_v2 = vmov 0   ;;  %s257_s0 = inlined_call_operand.vmem [shape: f32[16,128], index: 0, kind: input, shape index: {}]   ;;  %s258_s1 = inlined_call_operand.vmem [shape: s32[16,1], index: 1, kind: input, shape index: {}]   ;;  %s259_s2 = inlined_call_operand.hbm [shape: f32[1,1], index: 2, kind: output, shape index: {}]  }
   0x1   :  { %v63_v0 = vld [vmem:[%s257_s0] sm:$0xff]  ;;  %175 = vset.pattern.permute.xlu1 %v209_v2 }
   0x2   :  { %v65_v1 = vld [vmem:[%s258_s1] sm:$0xff]  ;;  %67 = vmax.xlane.f32.xlu0 %v63_v0 }
   0x3   :  { %7 = vsyncpa [#allocation4], 0  ;;  %v64_v3 = vld [vmem:[%s257_s0 + $0x8] sm:$0xff]  ;;  %92 = vperm.xlu1 %175, %v65_v1   ;;  %176 = vset.pattern.permute.xlu0 %v209_v2  ;;  %v89_v12 = vlaneseq  ;;  %vm60_vm2 = vcmask 7168   ;;  %v210_v19 = vmov 0.0   ;;  %s211_s0 = smov [#allocation3]  }
   0x4   :  { %v66_v4 = vld [vmem:[%s258_s1 + $0x8] sm:$0xff]  ;;  %61 = vst.msk [vmem:[#allocation2] sm:$0xff] %vm60_vm2, %v210_v19  ;;  %62 = vst.msk [vmem:[#allocation2 + $0x8] sm:$0xff] %vm60_vm2, %v210_v19  ;;  %s150_s1 = sshll.u32 %s211_s0, 4  ;;  %vm142_vm3 = vcmask 0   ;;  %s151_s1 = int_to_ptr.vmem [resolvable:$true] %s150_s1 }
   0x5   :  { %v90_v15 = vand.u32 127, %v89_v12  ;;  %s185_s18 = scalar_lea.vmem %s151_s1, 16  ;;  %s189_s19 = scalar_lea.vmem %s151_s1, 32 }
   0x6   :  { %69 = vmax.xlane.f32.xlu0 %v64_v3  ;;  %p186_p0 = scmp.ne.s32.totalorder %s151_s1, %s185_s18  ;;  %p190_p1 = scmp.lt.s32.totalorder %s151_s1, %s151_s1 }
   0x7   :  { %95 = vperm.xlu1 %175, %v66_v4   ;;  %p191_p2 = scmp.lt.s32.totalorder %s189_s19, %s185_s18 }
   0x9   :  { %p192_p3 = por %p191_p2, %p190_p1 }
   0xb   :  { %v117_v37 = vld [vmem:[#allocation2] sm:$0xff]  ;;  %v118_v43 = vld [vmem:[#allocation2 + $0x8] sm:$0xff]  ;;  %p193_p4 = pnand %p192_p3, %p186_p0 }
  0x82   :  { %v93_v14 = vpop.permute.xlu1 %92 }
  0x83   :  { %vm97_vm0 = vcmp.eq.s32.totalorder %v90_v15, %v93_v14 }
  0x86   :  { %v96_v16 = vpop.permute.xlu1 %95 }
  0x87   :  { %vm98_vm1 = vcmp.eq.s32.totalorder %v90_v15, %v96_v16 }
  0x8f   :  { %v68_v5 = vpop.xlane.xlu0 %67 }
  0x90   :  { %v71_v6 = vsub.f32 %v63_v0, %v68_v5 }
  0x92   :  { %v73_v7 = vmul.f32 1.442695, %v71_v6  ;;  %v99_v17 = vsel %vm97_vm0, %v71_v6, 0.0 }
  0x93   :  { %v70_v8 = vpop.xlane.xlu0 %69 }
  0x94   :  { %177 = vpow2.f32 %v73_v7  ;;  %v72_v9 = vsub.f32 %v64_v3, %v70_v8 }
  0x96   :  { %v75_v10 = vmul.f32 1.442695, %v72_v9  ;;  %v100_v18 = vsel %vm98_vm1, %v72_v9, 0.0 }
  0x98   :  { %179 = vpow2.f32 %v75_v10 }
  0x9e   :  { %v178_v11 = vpop.eup %177 }
  0x9f   :  { %77 = vadd.xlane.f32.xlu0 %v178_v11 }
  0xa2   :  { %v180_v13 = vpop.eup %179 }
  0xa3   :  { %85 = vadd.xlane.f32.xlu0 %v71_v6  ;;  %79 = vadd.xlane.f32.xlu1 %v180_v13 }
  0xa7   :  { %87 = vadd.xlane.f32.xlu0 %v72_v9 }
  0xab   :  { %101 = vadd.xlane.f32.xlu0 %v99_v17 }
  0xaf   :  { %103 = vadd.xlane.f32.xlu0 %v100_v18 }
 0x12c   :  { %v78_v20 = vpop.xlane.xlu0 %77 }
 0x12d   :  { %181 = vlog2.f32 %v78_v20 }
 0x130   :  { %v80_v21 = vpop.xlane.xlu1 %79  ;;  %v86_v22 = vpop.xlane.xlu0 %85 }
 0x131   :  { %183 = vlog2.f32 %v80_v21 }
 0x134   :  { %v88_v23 = vpop.xlane.xlu0 %87 }
 0x137   :  { %v182_v24 = vpop.eup %181 }
 0x138   :  { %v82_v25 = vmul.f32 0.6931472, %v182_v24  ;;  %v102_v26 = vpop.xlane.xlu0 %101 }
 0x13a   :  { %v105_v27 = vmul.f32 128.0, %v82_v25  ;;  %v111_v28 = vsub.f32 %v102_v26, %v82_v25 }
 0x13b   :  { %v184_v29 = vpop.eup %183 }
 0x13c   :  { %v84_v30 = vmul.f32 0.6931472, %v184_v29  ;;  %v107_v31 = vsub.f32 %v86_v22, %v105_v27  ;;  %v104_v32 = vpop.xlane.xlu0 %103  ;;  %v113_v35 = vmul.f32 0.8992126, %v111_v28 }
 0x13e   :  { %v109_v33 = vmul.f32 0.0007874016, %v107_v31  ;;  %v106_v34 = vmul.f32 128.0, %v84_v30  ;;  %v112_v36 = vsub.f32 %v104_v32, %v84_v30 }
 0x140   :  { %v108_v38 = vsub.f32 %v88_v23, %v106_v34  ;;  %v115_v39 = vadd.f32 %v113_v35, %v109_v33  ;;  %v114_v42 = vmul.f32 0.8992126, %v112_v36 }
 0x142   :  { %v110_v40 = vmul.f32 0.0007874016, %v108_v38  ;;  %v119_v41 = vadd.f32 %v117_v37, %v115_v39 }
 0x144   :  { %122 = vst.msk [vmem:[#allocation2] sm:$0xff] %vm60_vm2, %v119_v41  ;;  %v116_v44 = vadd.f32 %v114_v42, %v110_v40 }
 0x146   :  { %v120_v45 = vadd.f32 %v118_v43, %v116_v44 }
 0x148   :  { %123 = vst.msk [vmem:[#allocation2 + $0x8] sm:$0xff] %vm60_vm2, %v120_v45 }
 0x14b   :  { %v127_v46 = vld [vmem:[#allocation2] sm:$0xff] }
 0x14c   :  { %v129_v48 = vsel %vm60_vm2, %v127_v46, 0.0 }
 0x14f   :  { %v128_v47 = vld [vmem:[#allocation2 + $0x8] sm:$0xff] }
 0x150   :  { %v130_v49 = vsel %vm60_vm2, %v128_v47, 0.0 }
 0x151   :  { %v131_v50 = vadd.f32 %v130_v49, %v129_v48 }
 0x153   :  { %132 = vadd.xlane.f32.xlu0 %v131_v50 }
 0x1e0   :  { %v133_v51 = vpop.xlane.xlu0 %132 }
 0x1e1   :  { %v134_v52 = vrot.slane %v133_v51, 4 }
 0x1e3   :  { %v135_v53 = vadd.f32 %v134_v52, %v133_v51 }
 0x1e5   :  { %v136_v54 = vrot.slane %v135_v53, 2 }
 0x1e7   :  { %v137_v55 = vadd.f32 %v136_v54, %v135_v53 }
 0x1e9   :  { %v138_v56 = vrot.slane %v137_v55, 1 }
 0x1eb   :  { %v139_v57 = vadd.f32 %v138_v56, %v137_v55 }
 0x1ed   :  { %170 = vpush %v139_v57 }
 0x21e   :  { %s171_s17 = spop %170 }
 0x21f   :  { %v141_v58 = vstv %s171_s17 }
 0x220   :  { %143 = vst.msk [vmem:[#allocation3] sm:$0x1] %vm142_vm3, %v141_v58 }
 0x221   :  { %196 = shalt.err (!%p193_p4)
}
 0x222   :  { %s197_s22 = scalar_lea.hbm %s259_s2, 16 }
 0x223   :  { %p198_p5 = scmp.ne.s32.totalorder %s259_s2, %s197_s22  ;;  %p201_p6 = scmp.lt.u32.totalorder %s197_s22, %s259_s2 }
 0x225   :  { %p203_p7 = pnand %p201_p6, %p198_p5 }
 0x227   :  { %206 = shalt.err (!%p203_p7)
}
 0x228   :  { %153 = dma.vmem_to_hbm [thread:$0]  %s151_s1, 16, %s259_s2, [#allocation4]  }
 0x229   :  { %207 = dma.done.wait [#allocation4], 16  }
 0x22a   :  { %208 = vsyncadd [#allocation4], 4294967280 }
 0x22b   :  { %157 = vsyncpa [#allocation4], 1 }

</bundles_post_ra>
